<compile_context>
chip_gen: v5e
topology: v5e:2x2
jax: 0.10.0
libtpu: 0.0.40
codegen_flags: <defaults>
</compile_context>

<pallas_src>
import functools

import jax
import jax.numpy as jnp
from jax.experimental import pallas as pl
from jax.experimental.pallas import tpu as pltpu


def _spec_normalize_kernel(x_ref, o_ref, *, eps):
    # x_ref / o_ref: (rows_per_block, H*W).  Each row is one full (H, W) plane
    # of one (batch, channel) pair, so a per-row reduction == per-plane min/max.
    x = x_ref[...].astype(jnp.float32)
    mn = jnp.min(x, axis=-1, keepdims=True)          # (rows, 1)
    mx = jnp.max(x, axis=-1, keepdims=True)          # (rows, 1)
    inv = pl.reciprocal(mx - mn + eps, approx=True)  # per-row reciprocal (EUP)
    o_ref[...] = ((x - mn) * inv).astype(o_ref.dtype)


def spec_normalize(x: jax.Array, eps: float = 1e-8) -> jax.Array:
    """Pallas equivalent of SpecNormalize.forward.

    Args:
        x: (batch, channels, height=freq, width)
    Returns:
        (batch, channels, height, width), same dtype as x.
    """
    B, C, H, W = x.shape
    BC = B * C
    HW = H * W
    x2 = x.reshape(BC, HW)

    # Pick rows-per-block: lane-dense rows of length H*W, block ~<= 2 MiB so
    # 2x(in)+2x(out) double-buffering fits every generation's scoped VMEM.
    itemsize = jnp.dtype(x.dtype).itemsize
    target_bytes = 2 * 1024 * 1024
    rows = max(8, (target_bytes // max(1, HW * itemsize)) // 8 * 8)
    if rows >= BC:
        # Single block covering all rows (block dim == full array dim, so the
        # sublane-divisibility constraint is satisfied even if BC % 8 != 0).
        rows = BC
        grid = (1,)
    else:
        # rows is a multiple of 8; a partial trailing block is handled by
        # Pallas (out-of-bounds rows are masked on store, and the per-row
        # reduction keeps garbage padding rows from contaminating valid rows).
        grid = (pl.cdiv(BC, rows),)

    kernel = functools.partial(_spec_normalize_kernel, eps=eps)
    out2 = pl.pallas_call(
        kernel,
        out_shape=jax.ShapeDtypeStruct((BC, HW), x.dtype),
        grid_spec=pltpu.PrefetchScalarGridSpec(
            num_scalar_prefetch=0,
            grid=grid,
            in_specs=[pl.BlockSpec((rows, HW), lambda i: (i, 0))],
            out_specs=pl.BlockSpec((rows, HW), lambda i: (i, 0)),
        ),
        compiler_params=pltpu.CompilerParams(
            # Independent row-blocks: shard across the 2 TensorCores on v7x.
            dimension_semantics=("parallel",),
        ),
    )(x2)
    return out2.reshape(B, C, H, W)


def spec_normalize_ref(x: jax.Array, eps: float = 1e-8) -> jax.Array:
    """Pure-JAX reference matching the PyTorch semantics."""
    min_ = jnp.min(jnp.min(x, axis=-1, keepdims=True), axis=-2, keepdims=True)
    max_ = jnp.max(jnp.max(x, axis=-1, keepdims=True), axis=-2, keepdims=True)
    return (x - min_) / (max_ - min_ + eps)


if __name__ == "__main__":
    key = jax.random.PRNGKey(0)
    # (batch_size, in_channels, height=freq, width)
    x = jax.random.normal(key, (2, 4, 16, 16), dtype=jnp.float32)

    out = jax.block_until_ready(spec_normalize(x))
    ref = spec_normalize_ref(x)
    assert out.shape == x.shape and out.dtype == x.dtype
    # Tolerance accounts for the approximate per-row reciprocal.
    assert jnp.allclose(out, ref, atol=5e-3, rtol=5e-3), "mismatch vs reference"

    # bf16 input with a constant plane: f32 internal compute keeps eps alive,
    # so the constant plane normalizes to 0 instead of NaN.
    x_bf16 = x.astype(jnp.bfloat16).at[0, 0].set(jnp.bfloat16(3.0))
    out_bf16 = jax.block_until_ready(spec_normalize(x_bf16))
    assert out_bf16.dtype == jnp.bfloat16
    assert bool(jnp.all(jnp.isfinite(out_bf16.astype(jnp.float32))))
    assert bool(jnp.all(out_bf16[0, 0] == 0))

    print("KERNEL_OK")
</pallas_src>

<mosaic_0001>
module attributes {stable_mosaic.version = 11 : i64} {
  func.func @_spec_normalize_kernel(%arg0: i32, %arg1: memref<8x256xf32, #tpu.memory_space<vmem>>, %arg2: memref<8x256xf32, #tpu.memory_space<vmem>>) attributes {dimension_semantics = [#tpu.dimension_semantics<parallel>], iteration_bounds = array<i64: 1>, scalar_prefetch = 0 : i64, scratch_operands = 0 : i64, tpu.core_type = #tpu.core_type<tc>, window_params = [{transform_indices = @transform_0, window_bounds = array<i64: 8, 256>}, {transform_indices = @transform_1, window_bounds = array<i64: 8, 256>}]} {
    %c0 = arith.constant 0 : index
    %c0_0 = arith.constant 0 : index
    %0 = vector.load %arg1[%c0, %c0_0] : memref<8x256xf32, #tpu.memory_space<vmem>>, vector<8x256xf32>
    %cst = arith.constant dense<0x7F800000> : vector<8xf32>
    %1 = vector.multi_reduction <minimumf>, %0, %cst [1] : vector<8x256xf32> to vector<8xf32>
    %2 = vector.shape_cast %1 : vector<8xf32> to vector<8x1xf32>
    %cst_1 = arith.constant dense<0xFF800000> : vector<8xf32>
    %3 = vector.multi_reduction <maximumf>, %0, %cst_1 [1] : vector<8x256xf32> to vector<8xf32>
    %4 = vector.shape_cast %3 : vector<8xf32> to vector<8x1xf32>
    %5 = arith.subf %4, %2 : vector<8x1xf32>
    %cst_2 = arith.constant 9.99999993E-9 : f32
    %6 = vector.broadcast %cst_2 : f32 to vector<8x1xf32>
    %7 = arith.addf %5, %6 : vector<8x1xf32>
    %8 = tpu.reciprocal %7 {approx = true} : vector<8x1xf32> -> vector<8x1xf32>
    %9 = vector.broadcast %2 : vector<8x1xf32> to vector<8x256xf32>
    %10 = arith.subf %0, %9 : vector<8x256xf32>
    %11 = vector.broadcast %8 : vector<8x1xf32> to vector<8x256xf32>
    %12 = arith.mulf %10, %11 : vector<8x256xf32>
    %c0_3 = arith.constant 0 : index
    %c0_4 = arith.constant 0 : index
    %13 = vector.load %arg2[%c0_3, %c0_4] : memref<8x256xf32, #tpu.memory_space<vmem>>, vector<8x256xf32>
    tpu.vector_store %arg2[%c0_3, %c0_4], %12 {strides = array<i32>} : memref<8x256xf32, #tpu.memory_space<vmem>>, vector<8x256xf32>,
    return
  }
  func.func @transform_0(%arg0: i32) -> (i32, i32) {
    %c0_i32 = arith.constant 0 : i32
    %c0_i32_0 = arith.constant 0 : i32
    return %arg0, %c0_i32 : i32, i32
  }
  func.func @transform_1(%arg0: i32) -> (i32, i32) {
    %c0_i32 = arith.constant 0 : i32
    %c0_i32_0 = arith.constant 0 : i32
    return %arg0, %c0_i32 : i32, i32
  }
}

</mosaic_0001>

<bundles_post_ra>
// kernel: tpu_custom_call.1
= control target key start
LH: loop header
LB: loop body
LE: loop exit
PB: predicated region body
PF: predicated region fallthrough
CT: control target
= control target key end

     0   :  { %6 = vsyncpa [#allocation3], 0  ;;  %s131_s0 = inlined_call_operand.hbm [shape: f32[8,256], index: 0, kind: input, shape index: {}]   ;;  %s132_s1 = inlined_call_operand.hbm [shape: f32[8,256], index: 1, kind: output, shape index: {}]  }
   0x1   :  { %7 = vsyncpa [#allocation4], 0  ;;  %s13_s8 = sshll.u32 %s131_s0, 4  ;;  %s113_s9 = smov [#allocation2]   ;;  %s14_s8 = int_to_ptr.hbm [resolvable:$true] %s13_s8 }
   0x2   :  { %s15_s10 = sshll.u32 %s113_s9, 4  ;;  %s16_s10 = int_to_ptr.vmem [resolvable:$true] %s15_s10 }
   0x3   :  { %18 = dma.hbm_to_vmem [thread:$0]  %s14_s8, 256, %s16_s10, [#allocation3]  }
   0x4   :  { %109 = dma.done.wait [#allocation3], 256  }
   0x5   :  { %110 = vsyncadd [#allocation3], 4294967040  ;;  %v23_v0 = vld [vmem:[#allocation2] sm:$0xff]  ;;  %v24_v1 = vld [vmem:[#allocation2 + $0x8] sm:$0xff]  ;;  %s114_s0 = smov [#allocation5]   ;;  %s47_s14 = sshll.u32 %s132_s1, 4  ;;  %s48_s14 = int_to_ptr.hbm [resolvable:$true] %s47_s14 }
   0x6   :  { %v25_v2 = vmin.f32 %v23_v0, %v24_v1  ;;  %v28_v3 = vmax.f32 %v23_v0, %v24_v1  ;;  %s45_s11 = sshll.u32 %s114_s0, 4  ;;  %s46_s11 = int_to_ptr.vmem [resolvable:$true] %s45_s11 }
   0x8   :  { %26 = vmin.xlane.f32.xlu0 %v25_v2 }
  0x10   :  { %29 = vmax.xlane.f32.xlu0 %v28_v3 }
  0x7b   :  { %v27_v4 = vpop.xlane.xlu0 %26 }
  0x7c   :  { %v34_v8 = vsub.f32 %v23_v0, %v27_v4  ;;  %v35_v9 = vsub.f32 %v24_v1, %v27_v4 }
  0x83   :  { %v30_v5 = vpop.xlane.xlu0 %29 }
  0x84   :  { %v31_v6 = vsub.f32 %v30_v5, %v27_v4 }
  0x86   :  { %v32_v7 = vadd.f32 1e-08, %v31_v6 }
  0x88   :  { %59 = vrcp.f32 %v32_v7 }
  0x8e   :  { %v60_v10 = vpop.eup %59 }
  0x8f   :  { %v36_v11 = vmul.f32 %v60_v10, %v34_v8  ;;  %v37_v12 = vmul.f32 %v60_v10, %v35_v9 }
  0x91   :  { %38 = vst [vmem:[#allocation5] sm:$0xff] %v36_v11 }
  0x92   :  { %39 = vst [vmem:[#allocation5 + $0x8] sm:$0xff] %v37_v12 }
  0x93   :  { %50 = dma.vmem_to_hbm [thread:$0]  %s46_s11, 256, %s48_s14, [#allocation4]  }
  0x94   :  { %111 = dma.done.wait [#allocation4], 256  }
  0x95   :  { %112 = vsyncadd [#allocation4], 4294967040 }
  0x96   :  { %55 = vsyncpa [#allocation3], 1 }
  0x97   :  { %56 = vsyncpa [#allocation4], 1 }

</bundles_post_ra>
